<compile_context>
chip_gen: v7x
topology: tpu7x:2x2x1
jax: 0.10.0
libtpu: 0.0.40
codegen_flags: <defaults>
</compile_context>

<pallas_src>
import functools

import jax
import jax.numpy as jnp
from jax.experimental import pallas as pl
from jax.experimental.pallas import tpu as pltpu

_LOG2E = 1.4426950408889634


def _flash_attn_kernel(q_ref, k_ref, vt_ref, o_ref, m_sc, acc_sc,
                       *, vc, tk, L_valid, need_mask, exp_dtype):
    """One (q-tile, kv-tile) step of online-softmax attention (log2 domain).

    q_ref  : (tq, c)      pre-scaled queries (bf16, already * log2e/sqrt(c))
    k_ref  : (tk, c)      keys (bf16)
    vt_ref : (vc+1, tk)   value channels-first + appended ones row (bf16)
    o_ref  : (vc, tq)     output, channels-first (lanes = q positions)
    m_sc   : (1, tq)      running max of log2-domain scores
    acc_sc : (vc+1, tq)   running [weighted value ; softmax denominator]
    """
    ki = pl.program_id(2)

    @pl.when(ki == 0)
    def _init():
        m_sc[...] = jnp.full(m_sc.shape, -jnp.inf, dtype=m_sc.dtype)
        acc_sc[...] = jnp.zeros(acc_sc.shape, dtype=acc_sc.dtype)

    # scores^T: (tk, tq), contracting the channel dim of both bf16 operands
    # directly (no k.T relayout); f32 accumulation on the MXU.
    s_t = jax.lax.dot_general(
        k_ref[...], q_ref[...], (((1,), (1,)), ((), ())),
        preferred_element_type=jnp.float32)

    if need_mask:
        # Mask padded kv positions (only present when L was padded to L_pad).
        kv_idx = ki * tk + jax.lax.broadcasted_iota(jnp.int32, s_t.shape, 0)
        s_t = jnp.where(kv_idx < L_valid, s_t, -jnp.inf)

    m_prev = m_sc[...]                                           # (1, tq)
    m_new = jnp.maximum(m_prev, jnp.max(s_t, axis=0, keepdims=True))
    alpha = jnp.exp2(m_prev - m_new)                             # rescale of old stats
    # exp2 in bf16 on v6e/v7x (bf16 EUP ~2x), f32 on v5e; result is bf16 and
    # feeds the MXU directly.
    p_t = jnp.exp2((s_t - m_new).astype(exp_dtype)).astype(jnp.bfloat16)

    # Fused PV + denominator: the appended ones row in vt makes row `vc` of
    # the accumulator the softmax denominator (no cross-sublane sum needed).
    pv = jnp.dot(vt_ref[...], p_t, preferred_element_type=jnp.float32)
    acc_sc[...] = alpha * acc_sc[...] + pv
    m_sc[...] = m_new

    @pl.when(ki == pl.num_programs(2) - 1)
    def _finalize():
        inv_l = pl.reciprocal(acc_sc[vc:vc + 1, :], approx=True)  # EUP, ~free
        o_ref[...] = (acc_sc[:vc, :] * inv_l).astype(o_ref.dtype)


def _round_up(x, m):
    return ((x + m - 1) // m) * m


def _hw_config():
    """Generation-dependent tiling caps, VMEM limit and exp dtype."""
    kind = ""
    try:
        kind = jax.devices()[0].device_kind.lower()
    except Exception:
        pass
    vmem_cap = None
    try:
        vmem_cap = int(pltpu.get_tpu_info().vmem_capacity_bytes)
    except Exception:
        vmem_cap = None
    if vmem_cap is None:
        vmem_cap = 64 * 1024 * 1024 if "v7" in kind else 128 * 1024 * 1024
    small_vmem = vmem_cap <= 96 * 1024 * 1024          # v7x: 64 MiB physical
    vmem_limit = 36 * 1024 * 1024 if small_vmem else 64 * 1024 * 1024
    tq_cap = 512 if small_vmem else 1024               # bigger tq => fewer K passes
    tk_cap = 512
    bf16_exp = ("v6" in kind) or ("v7" in kind)        # v5e has no bf16 EUP
    exp_dtype = jnp.bfloat16 if bf16_exp else jnp.float32
    return tq_cap, tk_cap, vmem_limit, exp_dtype


def _choose_tiles(L, tq_cap, tk_cap):
    """Pick (tq, tk, L_pad) so that tq | L_pad, tk | L_pad, tiles % 128 == 0."""
    Lr = _round_up(L, 128)
    if Lr <= tq_cap:
        # Whole q axis as a single tile; tk = largest 128-multiple divisor.
        tq = Lr
        tk = 128
        for cand in range(min(tk_cap, Lr), 127, -128):
            if Lr % cand == 0:
                tk = cand
                break
        return tq, tk, Lr
    tq = 128
    while tq * 2 <= tq_cap:
        tq *= 2
    tk = min(tq, tk_cap)                               # tk divides tq
    return tq, tk, _round_up(L, tq)


def feature_flow_attention(feature0, flow, params):
    """Forward pass of FeatureFlowAttention (global attention path)."""
    # TODO(synk): forward_local_window_attn (F.unfold local-window path) is not implemented.
    b, c, h, w = feature0.shape
    vc = flow.shape[1]
    L = h * w

    # ---- projections (plain GEMMs, left to XLA; f32 like the PyTorch module) --
    x = feature0.reshape(b, c, L).transpose(0, 2, 1)            # (b, L, c)
    query = x @ params["wq"].T + params["bq"]                   # q_proj(feature0)
    key = query @ params["wk"].T + params["bk"]                 # k_proj(query)

    tq_cap, tk_cap, vmem_limit, exp_dtype = _hw_config()
    tq, tk, L_pad = _choose_tiles(L, tq_cap, tk_cap)
    pad = L_pad - L
    n_q, n_kv = L_pad // tq, L_pad // tk

    # bf16 MXU operands; 1/sqrt(c)*log2(e) folded into a *separate* scaled
    # copy of q (the unscaled query was already used above for k_proj).
    q_s = (query * (_LOG2E / float(c) ** 0.5)).astype(jnp.bfloat16)
    k_b = key.astype(jnp.bfloat16)

    # value, channels-first, with an appended ones row (fused softmax denom).
    value_t = flow.reshape(b, vc, L).astype(jnp.bfloat16)       # (b, vc, L)
    ones = jnp.ones((b, 1, L), jnp.bfloat16)
    vt = jnp.concatenate([value_t, ones], axis=1)               # (b, vc+1, L)

    if pad:
        q_s = jnp.pad(q_s, ((0, 0), (0, pad), (0, 0)))
        k_b = jnp.pad(k_b, ((0, 0), (0, pad), (0, 0)))
        vt = jnp.pad(vt, ((0, 0), (0, 0), (0, pad)))

    kernel = functools.partial(
        _flash_attn_kernel, vc=vc, tk=tk, L_valid=L,
        need_mask=(pad != 0), exp_dtype=exp_dtype)

    flops = 2 * b * L_pad * L_pad * (c + vc + 1)
    bytes_io = int(b * L_pad * c * 2                    # q: one pass
                   + b * n_q * L_pad * c * 2            # k: re-streamed per q tile
                   + b * n_q * L_pad * (vc + 1) * 2     # value (+ones) tiles
                   + b * vc * L_pad * 4)                # output

    out_t = pl.pallas_call(
        kernel,
        out_shape=jax.ShapeDtypeStruct((b, vc, L_pad), flow.dtype),
        grid=(b, n_q, n_kv),
        in_specs=[
            pl.BlockSpec((None, tq, c), lambda bi, qi, ki: (bi, qi, 0)),       # q (scaled, bf16)
            pl.BlockSpec((None, tk, c), lambda bi, qi, ki: (bi, ki, 0)),       # k (bf16)
            pl.BlockSpec((None, vc + 1, tk), lambda bi, qi, ki: (bi, 0, ki)),  # value+ones, channels-first
        ],
        out_specs=pl.BlockSpec((None, vc, tq), lambda bi, qi, ki: (bi, 0, qi)),
        scratch_shapes=[
            pltpu.VMEM((1, tq), jnp.float32),           # running max (log2 domain)
            pltpu.VMEM((vc + 1, tq), jnp.float32),      # value accumulator + denom row
        ],
        compiler_params=pltpu.CompilerParams(
            dimension_semantics=("parallel", "parallel", "arbitrary"),
            vmem_limit_bytes=vmem_limit),
        cost_estimate=pl.CostEstimate(
            flops=flops, transcendentals=b * L_pad * L_pad,
            bytes_accessed=bytes_io),
    )(q_s, k_b, vt)

    if pad:
        out_t = out_t[:, :, :L]
    # (b, vc, L) is already the channels-first layout the module returns.
    return out_t.reshape(b, vc, h, w)


def _reference(feature0, flow, params):
    """Pure-JAX f32 reference mirroring the PyTorch forward (global path)."""
    b, c, h, w = feature0.shape
    vc = flow.shape[1]
    L = h * w
    x = feature0.reshape(b, c, L).transpose(0, 2, 1)
    query = x @ params["wq"].T + params["bq"]
    key = query @ params["wk"].T + params["bk"]
    value = flow.reshape(b, vc, L).transpose(0, 2, 1)           # (b, L, vc)
    scores = jnp.einsum("bqc,bkc->bqk", query, key) / (float(c) ** 0.5)
    prob = jax.nn.softmax(scores, axis=-1)
    out = jnp.einsum("bqk,bkc->bqc", prob, value)               # (b, L, vc)
    return out.transpose(0, 2, 1).reshape(b, vc, h, w)


if __name__ == "__main__":
    key = jax.random.PRNGKey(0)
    b, c, h, w = 2, 32, 16, 16       # L = h*w = 256
    k1, k2, k3, k4, k5, k6 = jax.random.split(key, 6)

    feature0 = jax.random.normal(k1, (b, c, h, w), dtype=jnp.float32)
    flow = jax.random.normal(k2, (b, 2, h, w), dtype=jnp.float32)

    # xavier-uniform weights / small-uniform biases (as in the PyTorch module)
    limit = (6.0 / (c + c)) ** 0.5
    blim = 1.0 / (c ** 0.5)
    params = {
        "wq": jax.random.uniform(k3, (c, c), jnp.float32, -limit, limit),
        "bq": jax.random.uniform(k5, (c,), jnp.float32, -blim, blim),
        "wk": jax.random.uniform(k4, (c, c), jnp.float32, -limit, limit),
        "bk": jax.random.uniform(k6, (c,), jnp.float32, -blim, blim),
    }

    out = feature_flow_attention(feature0, flow, params)
    out = jax.block_until_ready(out)

    ref = _reference(feature0, flow, params)
    assert out.shape == (b, 2, h, w)
    # Tolerance accounts for bf16 Q/K/V + bf16 probabilities on the MXU and
    # the approximate EUP reciprocal in the softmax normalization.
    assert jnp.allclose(out, ref, rtol=2e-2, atol=2e-2), \
        float(jnp.max(jnp.abs(out - ref)))

    print("KERNEL_OK")
</pallas_src>

<mosaic_0001>
module attributes {stable_mosaic.version = 11 : i64} {
  func.func @_flash_attn_kernel(%arg0: i32, %arg1: i32, %arg2: i32, %arg3: memref<1x256x32xbf16, #tpu.memory_space<vmem>>, %arg4: memref<1x256x32xbf16, #tpu.memory_space<vmem>>, %arg5: memref<1x3x256xbf16, #tpu.memory_space<vmem>>, %arg6: memref<1x2x256xf32, #tpu.memory_space<vmem>>, %arg7: memref<1x256xf32, #tpu.memory_space<vmem>>, %arg8: memref<3x256xf32, #tpu.memory_space<vmem>>) attributes {dimension_semantics = [#tpu.dimension_semantics<parallel>, #tpu.dimension_semantics<parallel>, #tpu.dimension_semantics<arbitrary>], iteration_bounds = array<i64: 2, 1, 1>, scalar_prefetch = 0 : i64, scratch_operands = 2 : i64, tpu.core_type = #tpu.core_type<tc>, window_params = [{transform_indices = @transform_0, window_bounds = array<i64: 1, 256, 32>}, {transform_indices = @transform_1, window_bounds = array<i64: 1, 256, 32>}, {transform_indices = @transform_2, window_bounds = array<i64: 1, 3, 256>}, {transform_indices = @transform_3, window_bounds = array<i64: 1, 2, 256>}]} {
    %c0_i32 = arith.constant 0 : i32
    %0 = arith.cmpi eq, %arg2, %c0_i32 : i32
    %1 = arith.extui %0 : i1 to i32
    %c0_i32_0 = arith.constant 0 : i32
    %2 = arith.cmpi ne, %1, %c0_i32_0 : i32
    scf.if %2 {
      %cst_21 = arith.constant 0xFF800000 : f32
      %30 = vector.broadcast %cst_21 : f32 to vector<1x256xf32>
      %c0_22 = arith.constant 0 : index
      %c0_23 = arith.constant 0 : index
      %31 = vector.load %arg7[%c0_22, %c0_23] : memref<1x256xf32, #tpu.memory_space<vmem>>, vector<1x256xf32>
      tpu.vector_store %arg7[%c0_22, %c0_23], %30 {strides = array<i32>} : memref<1x256xf32, #tpu.memory_space<vmem>>, vector<1x256xf32>,
      %cst_24 = arith.constant 0.000000e+00 : f32
      %32 = vector.broadcast %cst_24 : f32 to vector<3x256xf32>
      %c0_25 = arith.constant 0 : index
      %c0_26 = arith.constant 0 : index
      %33 = vector.load %arg8[%c0_25, %c0_26] : memref<3x256xf32, #tpu.memory_space<vmem>>, vector<3x256xf32>
      tpu.vector_store %arg8[%c0_25, %c0_26], %32 {strides = array<i32>} : memref<3x256xf32, #tpu.memory_space<vmem>>, vector<3x256xf32>,
    } else {
    }
    %c0 = arith.constant 0 : index
    %c0_1 = arith.constant 0 : index
    %c0_2 = arith.constant 0 : index
    %3 = vector.load %arg4[%c0, %c0_1, %c0_2] : memref<1x256x32xbf16, #tpu.memory_space<vmem>>, vector<1x256x32xbf16>
    %4 = vector.shape_cast %3 : vector<1x256x32xbf16> to vector<256x32xbf16>
    %c0_3 = arith.constant 0 : index
    %c0_4 = arith.constant 0 : index
    %c0_5 = arith.constant 0 : index
    %5 = vector.load %arg3[%c0_3, %c0_4, %c0_5] : memref<1x256x32xbf16, #tpu.memory_space<vmem>>, vector<1x256x32xbf16>
    %6 = vector.shape_cast %5 : vector<1x256x32xbf16> to vector<256x32xbf16>
    %cst = arith.constant dense<0.000000e+00> : vector<256x256xf32>
    %7 = tpu.matmul %4, %6, %cst {dimension_numbers = #tpu.dot_dimension_numbers<[1], [1], [0], [0], [0, 0, 1, 0], [], []>} : vector<256x32xbf16>, vector<256x32xbf16>, vector<256x256xf32> -> vector<256x256xf32>
    %c0_6 = arith.constant 0 : index
    %c0_7 = arith.constant 0 : index
    %8 = vector.load %arg7[%c0_6, %c0_7] : memref<1x256xf32, #tpu.memory_space<vmem>>, vector<1x256xf32>
    %cst_8 = arith.constant dense<0xFF800000> : vector<256xf32>
    %9 = vector.multi_reduction <maximumf>, %7, %cst_8 [0] : vector<256x256xf32> to vector<256xf32>
    %10 = vector.shape_cast %9 : vector<256xf32> to vector<1x256xf32>
    %11 = arith.maximumf %8, %10 : vector<1x256xf32>
    %12 = arith.subf %8, %11 : vector<1x256xf32>
    %13 = math.exp2 %12 : vector<1x256xf32>
    %14 = vector.broadcast %11 : vector<1x256xf32> to vector<256x256xf32>
    %15 = arith.subf %7, %14 : vector<256x256xf32>
    %16 = math.exp2 %15 : vector<256x256xf32>
    %17 = arith.truncf %16 : vector<256x256xf32> to vector<256x256xbf16>
    %c0_9 = arith.constant 0 : index
    %c0_10 = arith.constant 0 : index
    %c0_11 = arith.constant 0 : index
    %18 = vector.load %arg5[%c0_9, %c0_10, %c0_11] : memref<1x3x256xbf16, #tpu.memory_space<vmem>>, vector<1x3x256xbf16>
    %19 = vector.shape_cast %18 : vector<1x3x256xbf16> to vector<3x256xbf16>
    %cst_12 = arith.constant dense<0.000000e+00> : vector<3x256xf32>
    %20 = tpu.matmul %19, %17, %cst_12 {dimension_numbers = #tpu.dot_dimension_numbers<[1], [0], [0], [1], [0, 0, 1, 1], [], []>} : vector<3x256xbf16>, vector<256x256xbf16>, vector<3x256xf32> -> vector<3x256xf32>
    %c0_13 = arith.constant 0 : index
    %c0_14 = arith.constant 0 : index
    %21 = vector.load %arg8[%c0_13, %c0_14] : memref<3x256xf32, #tpu.memory_space<vmem>>, vector<3x256xf32>
    %22 = vector.broadcast %13 : vector<1x256xf32> to vector<3x256xf32>
    %23 = arith.mulf %22, %21 : vector<3x256xf32>
    %24 = arith.addf %23, %20 : vector<3x256xf32>
    %c0_15 = arith.constant 0 : index
    %c0_16 = arith.constant 0 : index
    %25 = vector.load %arg8[%c0_15, %c0_16] : memref<3x256xf32, #tpu.memory_space<vmem>>, vector<3x256xf32>
    tpu.vector_store %arg8[%c0_15, %c0_16], %24 {strides = array<i32>} : memref<3x256xf32, #tpu.memory_space<vmem>>, vector<3x256xf32>,
    %c0_17 = arith.constant 0 : index
    %c0_18 = arith.constant 0 : index
    %26 = vector.load %arg7[%c0_17, %c0_18] : memref<1x256xf32, #tpu.memory_space<vmem>>, vector<1x256xf32>
    tpu.vector_store %arg7[%c0_17, %c0_18], %11 {strides = array<i32>} : memref<1x256xf32, #tpu.memory_space<vmem>>, vector<1x256xf32>,
    %c0_i32_19 = arith.constant 0 : i32
    %27 = arith.cmpi eq, %arg2, %c0_i32_19 : i32
    %28 = arith.extui %27 : i1 to i32
    %c0_i32_20 = arith.constant 0 : i32
    %29 = arith.cmpi ne, %28, %c0_i32_20 : i32
    scf.if %29 {
      %c2 = arith.constant 2 : index
      %c0_21 = arith.constant 0 : index
      %30 = vector.load %arg8[%c2, %c0_21] : memref<3x256xf32, #tpu.memory_space<vmem>>, vector<1x256xf32>
      %31 = tpu.reciprocal %30 {approx = true} : vector<1x256xf32> -> vector<1x256xf32>
      %c0_22 = arith.constant 0 : index
      %c0_23 = arith.constant 0 : index
      %32 = vector.load %arg8[%c0_22, %c0_23] : memref<3x256xf32, #tpu.memory_space<vmem>>, vector<2x256xf32>
      %33 = vector.broadcast %31 : vector<1x256xf32> to vector<2x256xf32>
      %34 = arith.mulf %32, %33 : vector<2x256xf32>
      %c0_24 = arith.constant 0 : index
      %c0_25 = arith.constant 0 : index
      %c0_26 = arith.constant 0 : index
      %35 = vector.load %arg6[%c0_24, %c0_25, %c0_26] : memref<1x2x256xf32, #tpu.memory_space<vmem>>, vector<1x2x256xf32>
      %36 = vector.shape_cast %35 : vector<1x2x256xf32> to vector<2x256xf32>
      %37 = vector.shape_cast %34 : vector<2x256xf32> to vector<1x2x256xf32>
      tpu.vector_store %arg6[%c0_24, %c0_25, %c0_26], %37 {strides = array<i32>} : memref<1x2x256xf32, #tpu.memory_space<vmem>>, vector<1x2x256xf32>,
    } else {
    }
    return
  }
  func.func @transform_0(%arg0: i32, %arg1: i32, %arg2: i32) -> (i32, i32, i32) {
    %c0_i32 = arith.constant 0 : i32
    %c0_i32_0 = arith.constant 0 : i32
    return %arg0, %arg1, %c0_i32 : i32, i32, i32
  }
  func.func @transform_1(%arg0: i32, %arg1: i32, %arg2: i32) -> (i32, i32, i32) {
    %c0_i32 = arith.constant 0 : i32
    %c0_i32_0 = arith.constant 0 : i32
    return %arg0, %arg2, %c0_i32 : i32, i32, i32
  }
  func.func @transform_2(%arg0: i32, %arg1: i32, %arg2: i32) -> (i32, i32, i32) {
    %c0_i32 = arith.constant 0 : i32
    %c0_i32_0 = arith.constant 0 : i32
    return %arg0, %c0_i32, %arg2 : i32, i32, i32
  }
  func.func @transform_3(%arg0: i32, %arg1: i32, %arg2: i32) -> (i32, i32, i32) {
    %c0_i32 = arith.constant 0 : i32
    %c0_i32_0 = arith.constant 0 : i32
    return %arg0, %c0_i32, %arg1 : i32, i32, i32
  }
}

</mosaic_0001>

<bundles_post_ra>
// kernel: tpu_custom_call.1
= control target key start
LH: loop header
LB: loop body
LE: loop exit
PB: predicated region body
PF: predicated region fallthrough
CT: control target
= control target key end

     0   :  { %s2839_s0 = inlined_call_operand.hbm [shape: bf16[2,256,32], index: 0, kind: input, shape index: {}]   ;;  %s2840_s1 = inlined_call_operand.hbm [shape: bf16[2,256,32], index: 1, kind: input, shape index: {}]   ;;  %s2841_s2 = inlined_call_operand.hbm [shape: bf16[2,3,256], index: 2, kind: input, shape index: {}]   ;;  %s2842_s3 = inlined_call_operand.hbm [shape: f32[2,2,256], index: 3, kind: output, shape index: {}]  }
   0x1   :  { %2911 = sst [smem:[#allocation49_spill]] %s2839_s0 }
   0x2   :  { %2912 = sst [smem:[#allocation50_spill]] %s2840_s1 }
   0x3   :  { %8 = vsyncpa [#allocation5], 0 }
   0x4   :  { %10 = vsyncpa [#allocation5 + $0x1], 0 }
   0x5   :  { %11 = vsyncpa [#allocation8], 0 }
   0x6   :  { %13 = vsyncpa [#allocation8 + $0x1], 0 }
   0x7   :  { %14 = vsyncpa [#allocation6], 0 }
   0x8   :  { %16 = vsyncpa [#allocation6 + $0x1], 0  ;;  %s1939_s12 = smov 0   ;;  %s1941_s13 = smov 0  }
   0x9   :  { %s1943_s14 = smov 0   ;;  %s1945_s15 = smov 0  }
   0xa   :  { %s1947_s16 = smov 0   ;;  %s1949_s17 = smov 0  }
   0xb LB: > { %2913 = sst [smem:[#allocation14_spill]] %s1896_s14  ;;  %s1970_s18 = sadd.s32 4294967295, %s1908_s17   ;;  %s1908_s17 = sphi %s1949_s17, %s22_s17   ;;  %s1904_s16 = sphi %s1947_s16, %s3080_s16   ;;  %s1900_s15 = sphi %s1945_s15, %s3079_s15   ;;  %s1896_s14 = sphi %s1943_s14, %s3075_s14   ;;  %s1892_s13 = sphi %s1941_s13, %s3078_s13   ;;  %s1888_s12 = sphi %s1939_s12, %s3077_s12  }
   0xc   : > { %2914 = sst [smem:[#allocation15_spill]] %s1908_s17  ;;  %s1358_s19 = sadd.s32 4294967294, %s1908_s17  }
   0xd   : > { %s41_s20 = sadd.s32 1, %s1904_s16  ;;  %s50_s21 = sadd.s32 1, %s1896_s14 }
   0xe   : > { %p43_p0 = scmp.ge.s32.totalorder %s41_s20, 2  ;;  %p57_p1 = scmp.ne.s32.totalorder %s1896_s14, %s1892_s13 }
   0xf   : > { %p58_p2 = scmp.eq.s32.totalorder %s1908_s17, 0  ;;  %p63_p3 = scmp.ne.s32.totalorder %s1892_s13, %s1888_s12 }
  0x10   : > { %s3082_s20 = smov (%p43_p0, %s41_s20), 0  ;;  %p64_p5 = scmp.eq.s32.totalorder %s1970_s18, 0 }
  0x11   : > { %2915 = sst [smem:[#allocation16_spill]] %s3082_s20  ;;  %p1982_p4 = por %p58_p2, %p57_p1 }
  0x12   : > { %s45_s23 = ssub.s32 %s1904_s16, %s3082_s20  ;;  %p145_p6 = scmp.eq.s32.totalorder %s1970_s18, 1 }
  0x13   : > { %p48_p7 = scmp.eq.s32.totalorder %s45_s23, 0  ;;  %p1990_p8 = por %p64_p5, %p63_p3 }
  0x14   : > { %p1994_p9 = por %p145_p6, %p57_p1  ;;  %p151_p10 = scmp.eq.s32.totalorder %s1358_s19, 1 }
  0x15   : > { %s2917_s24 = scalar_select %p1990_p8, 1, 0 }
  0x16   : > { %s2918_s25 = scalar_select %p1994_p9, 1, 0 }
  0x17   : > { %s1999_s26 = scalar_select %p48_p7, %s1896_s14, %s50_s21  }
  0x18   : > { %p2001_p11 = por %p151_p10, %p63_p3  ;;  %p1512_p13 = scmp.lt.s32.totalorder %s1908_s17, 2 }
  0x19   : > { %2919 = sst [smem:[#allocation17_spill]] %s1999_s26  ;;  %s2008_s28 = sand.u32 1, %s1896_s14  }
  0x1a   : > { %s2920_s27 = scalar_select %p2001_p11, 1, 0 }
  0x1b   : > { %s1361_s29 = sshll.u32 %s2008_s28, 7  ;;  %s1430_s30 = sshll.u32 %s1904_s16, 11 }
  0x1c   : > { %2921 = sst [smem:[#allocation18_spill]] %s2920_s27  ;;  %p2014_p0 = pnand %p1512_p13, %p1982_p4 }
  0x1d   : > { %s194_s5 = sand.u32 1, %s1908_s17   ;;  %s2923_s1 = sld [smem:[#allocation50_spill]] }
  0x1e   : > { %s2922_s4 = scalar_select %p2014_p0, 1, 0 }
  0x1f   : > { %s198_s9 = scalar_lea.vmem [#allocation7], %s1361_s29  ;;  %s2032_s11 = scalar_lea.sflag [#allocation8], %s194_s5 }
  0x20   : > { %s207_s10 = sshll.u32 %s198_s9, 4  ;;  %p2038_p4 = pneg %p2014_p0  ;;  %s2029_s10 = int_to_ptr.vmem [resolvable:$true] %s207_s10 }
  0x23   : > { %s2024_s8 = scalar_lea.hbm %s2923_s1, %s1430_s30  ;;  %s1737_s6 = scalar_lea.hbm %s2923_s1, 4096 }
  0x24   : > { %s1732_s19 = scalar_lea.hbm %s2024_s8, 2048  ;;  %p1738_p7 = scmp.lt.u32.totalorder %s2024_s8, %s2923_s1 }
  0x25   : > { %p1733_p3 = scmp.ne.s32.totalorder %s2024_s8, %s1732_s19  ;;  %p1739_p10 = scmp.lt.u32.totalorder %s1737_s6, %s1732_s19 }
  0x26   : > { %p1741_p12 = scmp.lt.u32.totalorder %s1732_s19, %s2024_s8 }
  0x27   : > { %p1735_p5 = pnand %p2038_p4, %p1733_p3  ;;  %p1740_p13 = por %p1739_p10, %p1738_p7 }
  0x29   : > { %p1736_p6 = pneg %p1735_p5  ;;  %p1742_p1 = por %p1741_p12, %p1740_p13 }
  0x2b   : > { %p1743_p2 = pnand %p1742_p1, %p1736_p6 }
  0x2d   : > { %1746 = shalt.err (!%p1743_p2)
}
  0x2e   : > { %s1747_s5 = scalar_lea.vmem %s2029_s10, 2048  ;;  %s1910_s22 = smov [#allocation7]  }
  0x2f   : > { %p1748_p3 = scmp.ne.s32.totalorder %s2029_s10, %s1747_s5  ;;  %s1752_s23 = sshll.u32 %s1910_s22, 4  ;;  %s1753_s23 = int_to_ptr.vmem [resolvable:$false] %s1752_s23 }
  0x30   : > { %s1754_s7 = scalar_lea.vmem %s1753_s23, 4096  ;;  %p1755_p9 = scmp.lt.s32.totalorder %s2029_s10, %s1753_s23 }
  0x31   : > { %p1750_p5 = pnand %p1748_p3, %p2038_p4  ;;  %p1756_p8 = scmp.lt.s32.totalorder %s1754_s7, %s1747_s5 }
  0x33   : > { %p1751_p11 = pneg %p1750_p5  ;;  %p1757_p7 = por %p1756_p8, %p1755_p9 }
  0x35   : > { %p1758_p10 = pnand %p1757_p7, %p1751_p11 }
  0x37   : > { %1761 = shalt.err (!%p1758_p10)
}
  0x38   : > { %s2845_s19 = smov 64   ;;  %s2846_s6 = smov 4  }
  0x39   : > { %1504 = dma.hbm_to_vmem [thread:$0]  (!%p2014_p0), %s2024_s8, 2048, %s2029_s10, %s2032_s11, %s2845_s19, %s2845_s19, %s2846_s6  }
  0x3a   : > { %p2925_p8 = scmp.lt.s32.totalorder %s1908_s17, 3  ;;  %p2926_p9 = scmp.ge.s32.totalorder %s1908_s17, 1 }
  0x3b   : > { %s2928_s0 = sld [smem:[#allocation49_spill]]  ;;  %s175_s7 = scalar_lea.vmem [#allocation4], %s1361_s29 }
  0x3c   : > { %p2069_p11 = pnand %p2926_p9, %p2925_p8  ;;  %s184_s1 = sshll.u32 %s175_s7, 4  ;;  %s2083_s1 = int_to_ptr.vmem [resolvable:$true] %s184_s1 }
  0x3d   : > { %s1367_s8 = sshll.u32 %s2008_s28, 2  ;;  %s172_s10 = scalar_lea.sflag [#allocation5], %s2008_s28 }
  0x3e   : > { %s2927_s9 = scalar_select %p2069_p11, 1, 0 }
  0x41   : > { %s2078_s23 = scalar_lea.hbm %s2928_s0, %s1430_s30  ;;  %s1767_s30 = scalar_lea.hbm %s2928_s0, 4096 }
  0x42   : > { %s1762_s19 = scalar_lea.hbm %s2078_s23, 2048  ;;  %p1768_p6 = scmp.lt.u32.totalorder %s2078_s23, %s2928_s0 }
  0x43   : > { %p1763_p12 = scmp.ne.s32.totalorder %s2078_s23, %s1762_s19  ;;  %p1769_p13 = scmp.lt.u32.totalorder %s1767_s30, %s1762_s19 }
  0x44   : > { %p1771_p5 = scmp.lt.u32.totalorder %s1762_s19, %s2078_s23 }
  0x45   : > { %p1765_p1 = pnand %p1763_p12, %p2038_p4  ;;  %p1770_p3 = por %p1769_p13, %p1768_p6 }
  0x47   : > { %p1766_p2 = pneg %p1765_p1  ;;  %p1772_p7 = por %p1771_p5, %p1770_p3 }
  0x49   : > { %p1773_p10 = pnand %p1772_p7, %p1766_p2 }
  0x4b   : > { %1776 = shalt.err (!%p1773_p10)
}
  0x4c   : > { %s1777_s29 = scalar_lea.vmem %s2083_s1, 2048  ;;  %s1913_s6 = smov [#allocation4]  }
  0x4d   : > { %p1778_p8 = scmp.ne.s32.totalorder %s2083_s1, %s1777_s29  ;;  %s1782_s7 = sshll.u32 %s1913_s6, 4  ;;  %s1783_s7 = int_to_ptr.vmem [resolvable:$false] %s1782_s7 }
  0x4e   : > { %s1784_s20 = scalar_lea.vmem %s1783_s7, 4096  ;;  %p1785_p1 = scmp.lt.s32.totalorder %s2083_s1, %s1783_s7 }
  0x4f   : > { %p1780_p9 = pnand %p1778_p8, %p2038_p4  ;;  %p1786_p11 = scmp.lt.s32.totalorder %s1784_s20, %s1777_s29 }
  0x51   : > { %p1781_p12 = pneg %p1780_p9  ;;  %p1787_p6 = por %p1786_p11, %p1785_p1 }
  0x53   : > { %p1788_p13 = pnand %p1787_p6, %p1781_p12 }
  0x55   : > { %1791 = shalt.err (!%p1788_p13)
}
  0x56   : > { %s2929_s19 = smov 4   ;;  %s2930_s5 = smov 64  }
  0x57   : > { %1501 = dma.hbm_to_vmem [thread:$0]  (!%p2014_p0), %s2078_s23, 2048, %s2083_s1, %s172_s10, %s2930_s5, %s2930_s5, %s2929_s19  }
  0x58   : > { %s1432_s30 = sshll.u32 %s1904_s16, 6  ;;  %s221_s22 = scalar_lea.vmem [#allocation9], %s1367_s8 }
  0x59   : > { %s231_s29 = sshll.u32 %s221_s22, 4  ;;  %s229_s20 = scalar_lea.hbm %s2841_s2, %s1432_s30  ;;  %s232_s29 = int_to_ptr.vmem [resolvable:$true] %s231_s29 }
  0x5a   : > { %s1792_s0 = scalar_lea.hbm %s229_s20, 64  ;;  %s1797_s17 = scalar_lea.hbm %s2841_s2, 128 }
  0x5b   : > { %p1793_p11 = scmp.ne.s32.totalorder %s229_s20, %s1792_s0  ;;  %p1798_p5 = scmp.lt.u32.totalorder %s229_s20, %s2841_s2 }
  0x5c   : > { %p1799_p7 = scmp.lt.u32.totalorder %s1797_s17, %s1792_s0  ;;  %p1801_p8 = scmp.lt.u32.totalorder %s1792_s0, %s229_s20 }
  0x5d   : > { %p1795_p2 = pnand %p1793_p11, %p2038_p4 }
  0x5e   : > { %p1800_p10 = por %p1799_p7, %p1798_p5 }
  0x5f   : > { %p1796_p3 = pneg %p1795_p2 }
  0x60   : > { %p1802_p9 = por %p1801_p8, %p1800_p10 }
  0x62   : > { %p1803_p12 = pnand %p1802_p9, %p1796_p3 }
  0x64   : > { %1806 = shalt.err (!%p1803_p12)
}
  0x65   : > { %s1807_s28 = scalar_lea.vmem %s232_s29, 64  ;;  %s1914_s23 = smov [#allocation9]  }
  0x66   : > { %p1808_p1 = scmp.ne.s32.totalorder %s232_s29, %s1807_s28  ;;  %s1812_s8 = sshll.u32 %s1914_s23, 4  ;;  %s1813_s8 = int_to_ptr.vmem [resolvable:$false] %s1812_s8 }
  0x67   : > { %s1814_s14 = scalar_lea.vmem %s1813_s8, 128  ;;  %p1815_p11 = scmp.lt.s32.totalorder %s232_s29, %s1813_s8 }
  0x68   : > { %p1810_p6 = pnand %p1808_p1, %p2038_p4  ;;  %p1816_p2 = scmp.lt.s32.totalorder %s1814_s14, %s1807_s28 }
  0x6a   : > { %p1811_p13 = pneg %p1810_p6  ;;  %p1817_p0 = por %p1816_p2, %p1815_p11 }
  0x6c   : > { %p1818_p5 = pnand %p1817_p0, %p1811_p13 }
  0x6e   : > { %1821 = shalt.err (!%p1818_p5)
}
  0x6f   : > { %p2931_p7 = scmp.ne.s32.totalorder %s2922_s4, 0  ;;  %p2932_p3 = scmp.ne.s32.totalorder %s2927_s9, 0 }
  0x71   : > { %1507 = dma.hbm_to_vmem [thread:$0]  (!%p2931_p7), %s229_s20, 64, %s232_s29, %s2032_s11  }
  0x72   : > { %240 = sbr.rel (%p2932_p3) target bundleno = 894 (0x37e), region = 32 }
  0x79   : > { %s2134_s0 = sand.u32 1, %s1892_s13   ;;  %p2933_p4 = scmp.ne.s32.totalorder %s2917_s24, 0 }
  0x7a   : > { %s1371_s17 = sshll.u32 %s2134_s0, 7  ;;  %s243_s26 = scalar_lea.sflag [#allocation5], %s2134_s0 }
  0x7b   : > { %s2138_s27 = scalar_lea.vmem [#allocation4], %s1371_s17 }
  0x7c   : > { %1875 = dma.done.wait (%p2933_p4), %s243_s26, 2048  }
  0x7d   : > { %1877 = vsyncadd (%p2933_p4), %s243_s26, 4294965248  ;;  %s251_s4 = sand.u32 1, %s1970_s18   ;;  %s2145_s21 = scalar_lea.vmem [#allocation7], %s1371_s17 }
  0x7e   : > { %s252_s11 = scalar_lea.sflag [#allocation8], %s251_s4 }
  0x7f   : > { %1879 = dma.done.wait (%p2933_p4), %s252_s11, 2112  }
  0x80   : > { %1881 = vsyncadd (%p2933_p4), %s252_s11, 4294965184  ;;  %vm536_vm0 = vcmask 261120   ;;  %v1567_v0 = vld [vmem:[%s2138_s27 + $0x40] sm:$0xff]   ;;  %v1569_v2 = vld [vmem:[%s2138_s27 + $0x48] sm:$0xff]   ;;  %v2853_v44 = vlaneseq  ;;  %v1915_v51 = vmov -inf   ;;  %s1373_s18 = sshll.u32 %s2134_s0, 2 }
  0x81   : > { %v1568_v1 = vld [vmem:[%s2138_s27] sm:$0xff]   ;;  %1482 = vmatprep.subr.msk.bf16.mxu0 %vm536_vm0, %v1567_v0  ;;  %v1570_v4 = vld [vmem:[%s2138_s27 + $0x8] sm:$0xff]   ;;  %v1571_v6 = vld [vmem:[%s2138_s27 + $0x50] sm:$0xff]   ;;  %s264_s24 = scalar_lea.vmem [#allocation9], %s1373_s18  ;;  %s296_s9 = scalar_lea.vmem [#allocation10], %s1373_s18 }
  0x82   : > { %v586_v3 = vsel %vm536_vm0, %v1568_v1, 0  ;;  %v589_v5 = vsel %vm536_vm0, %v1570_v4, 0  ;;  %v1572_v7 = vld [vmem:[%s2138_s27 + $0x10] sm:$0xff]   ;;  %v1583_v8 = vld [vmem:[%s2145_s21] sm:$0xff]   ;;  %v1573_v10 = vld [vmem:[%s2138_s27 + $0x58] sm:$0xff]   ;;  %vm2246_vm1 = vcmp.lt.s32.totalorder %v2853_v44, 256 }
  0x83   : > { %1435 = vmatpush3.bf16.xpose.msra.mxu0 %v586_v3  ;;  %v592_v9 = vsel %vm536_vm0, %v1572_v7, 0  ;;  %1450 = vmatprep.mubr.msk.bf16.mxu0 %vm536_vm0, %v1583_v8  ;;  %v1574_v11 = vld [vmem:[%s2138_s27 + $0x18] sm:$0xff]   ;;  %v1575_v13 = vld [vmem:[%s2138_s27 + $0x60] sm:$0xff]   ;;  %v1577_v16 = vld [vmem:[%s2138_s27 + $0x68] sm:$0xff]   ;;  %310 = vst.msk [vmem:[#allocation2] sm:$0x3] %vm2246_vm1, %v1915_v51 }
  0x84   : > { %1483 = vmatprep.subr.msk.bf16.mxu0 %vm536_vm0, %v1569_v2  ;;  %v595_v12 = vsel %vm536_vm0, %v1574_v11, 0  ;;  %v1576_v14 = vld [vmem:[%s2138_s27 + $0x20] sm:$0xff]   ;;  %v1578_v17 = vld [vmem:[%s2138_s27 + $0x28] sm:$0xff]   ;;  %v1579_v19 = vld [vmem:[%s2138_s27 + $0x70] sm:$0xff]   ;;  %s1221_s10 = sshll.u32 %s296_s9, 4  ;;  %s1433_s19 = sshll.u32 %s1900_s15, 6  ;;  %s2787_s10 = int_to_ptr.vmem [resolvable:$true] %s1221_s10 }
  0x85   : > { %v598_v15 = vsel %vm536_vm0, %v1576_v14, 0  ;;  %v601_v18 = vsel %vm536_vm0, %v1578_v17, 0  ;;  %v1580_v20 = vld [vmem:[%s2138_s27 + $0x30] sm:$0xff]   ;;  %v1581_v22 = vld [vmem:[%s2138_s27 + $0x78] sm:$0xff]   ;;  %v1584_v25 = vld [vmem:[%s2145_s21 + $0x8] sm:$0xff]   ;;  %s2792_s22 = scalar_lea.hbm %s2842_s3, %s1433_s19  ;;  %s1205_s29 = scalar_lea.sflag [#allocation6], %s2134_s0 }
  0x86   : > { %v604_v21 = vsel %vm536_vm0, %v1580_v20, 0  ;;  %v1582_v23 = vld [vmem:[%s2138_s27 + $0x38] sm:$0xff]   ;;  %v1585_v26 = vld [vmem:[%s2145_s21 + $0x10] sm:$0xff]   ;;  %v1587_v28 = vld [vmem:[%s2145_s21 + $0x20] sm:$0xff]   ;;  %s1822_s6 = scalar_lea.vmem %s2787_s10, 64  ;;  %p3069_p10 = scmp.ne.s32.totalorder %s2918_s25, 0 }
  0x87   : > { %v607_v24 = vsel %vm536_vm0, %v1582_v23, 0  ;;  %v1586_v27 = vld [vmem:[%s2145_s21 + $0x18] sm:$0xff]   ;;  %v1588_v29 = vld [vmem:[%s2145_s21 + $0x28] sm:$0xff]   ;;  %v1589_v30 = vld [vmem:[%s2145_s21 + $0x30] sm:$0xff]   ;;  %p1823_p0 = scmp.ne.s32.totalorder %s2787_s10, %s1822_s6  ;;  %s1918_s15 = smov [#allocation10]  }
  0x88   : > { %v1590_v31 = vld [vmem:[%s2145_s21 + $0x38] sm:$0xff]   ;;  %v1591_v32 = vld [vmem:[%s2145_s21 + $0x40] sm:$0xff]   ;;  %v1592_v33 = vld [vmem:[%s2145_s21 + $0x48] sm:$0xff]   ;;  %s1826_s7 = sshll.u32 %s1918_s15, 4  ;;  %s1827_s7 = int_to_ptr.vmem [resolvable:$false] %s1826_s7 }
  0x89   : > { %v1593_v34 = vld [vmem:[%s2145_s21 + $0x50] sm:$0xff]   ;;  %v1594_v35 = vld [vmem:[%s2145_s21 + $0x58] sm:$0xff]   ;;  %v1595_v36 = vld [vmem:[%s2145_s21 + $0x60] sm:$0xff]   ;;  %p1824_p8 = pnand %p1823_p0, %p3069_p10  ;;  %s1828_s20 = scalar_lea.vmem %s1827_s7, 128 }
  0x8a   : > { %v1596_v37 = vld [vmem:[%s2145_s21 + $0x68] sm:$0xff]   ;;  %v1597_v38 = vld [vmem:[%s2145_s21 + $0x70] sm:$0xff]   ;;  %v1598_v39 = vld [vmem:[%s2145_s21 + $0x78] sm:$0xff]   ;;  %p1829_p12 = scmp.lt.s32.totalorder %s2787_s10, %s1827_s7  ;;  %p1830_p1 = scmp.lt.s32.totalorder %s1828_s20, %s1822_s6 }
  0x8b   : > { %1437 = vmatpush3.bf16.xpose.msra.mxu0 %v589_v5  ;;  %p1825_p9 = pneg %p1824_p8 }
  0x8c   : > { %1484 = vmatprep.subr.msk.bf16.mxu0 %vm536_vm0, %v1571_v6  ;;  %p1831_p6 = por %p1830_p1, %p1829_p12 }
  0x8e   : > { %p1832_p13 = pnand %p1831_p6, %p1825_p9 }
  0x93   : > { %1439 = vmatpush3.bf16.xpose.msra.mxu0 %v592_v9 }
  0x94   : > { %1485 = vmatprep.subr.msk.bf16.mxu0 %vm536_vm0, %v1573_v10 }
  0x9b   : > { %1441 = vmatpush3.bf16.xpose.msra.mxu0 %v595_v12 }
  0x9c   : > { %1486 = vmatprep.subr.msk.bf16.mxu0 %vm536_vm0, %v1575_v13 }
  0xa3   : > { %1443 = vmatpush3.bf16.xpose.msra.mxu0 %v598_v15 }
  0xa4   : > { %1487 = vmatprep.subr.msk.bf16.mxu0 %vm536_vm0, %v1577_v16 }
  0xab   : > { %1445 = vmatpush3.bf16.xpose.msra.mxu0 %v601_v18 }
  0xac   : > { %1488 = vmatprep.subr.msk.bf16.mxu0 %vm536_vm0, %v1579_v19 }
  0xb3   : > { %1447 = vmatpush3.bf16.xpose.msra.mxu0 %v604_v21 }
  0xb4   : > { %1489 = vmatprep.subr.msk.bf16.mxu0 %vm536_vm0, %v1581_v22 }
  0xbb   : > { %1449 = vmatpush3.bf16.xpose.msra.mxu0 %v607_v24 }
  0xc2   : > { %1451 = vmatmul.mubr.msk.bf16.vlgmr.msra.gmra.mrb[0].mxu0 %vm536_vm0, %v1583_v8 }
  0xc3   : > { %1452 = vmatprep.mubr.msk.bf16.mxu0 %vm536_vm0, %v1584_v25 }
  0xca   : > { %1453 = vmatmul.mubr.msk.bf16.gmra.mrb[4].mxu0 %vm536_vm0, %v1584_v25 }
  0xcb   : > { %1454 = vmatprep.mubr.msk.bf16.mxu0 %vm536_vm0, %v1585_v26 }
  0xd2   : > { %1455 = vmatmul.mubr.msk.bf16.gmra.mrb[8].mxu0 %vm536_vm0, %v1585_v26 }
  0xd3   : > { %1456 = vmatprep.mubr.msk.bf16.mxu0 %vm536_vm0, %v1586_v27 }
  0xda   : > { %1457 = vmatmul.mubr.msk.bf16.gmra.mrb[12].mxu0 %vm536_vm0, %v1586_v27 }
  0xdb   : > { %1458 = vmatprep.mubr.msk.bf16.mxu0 %vm536_vm0, %v1587_v28 }
  0xe2   : > { %1459 = vmatmul.mubr.msk.bf16.gmra.mrb[16].mxu0 %vm536_vm0, %v1587_v28 }
  0xe3   : > { %1460 = vmatprep.mubr.msk.bf16.mxu0 %vm536_vm0, %v1588_v29 }
  0xea   : > { %1461 = vmatmul.mubr.msk.bf16.gmra.mrb[20].mxu0 %vm536_vm0, %v1588_v29 }
  0xeb   : > { %1462 = vmatprep.mubr.msk.bf16.mxu0 %vm536_vm0, %v1589_v30 }
  0xf2   : > { %1463 = vmatmul.mubr.msk.bf16.gmra.mrb[24].mxu0 %vm536_vm0, %v1589_v30 }
  0xf3   : > { %1464 = vmatprep.mubr.msk.bf16.mxu0 %vm536_vm0, %v1590_v31 }
  0xfa   : > { %1465 = vmatmul.mubr.msk.bf16.gmra.mrb[28].mxu0 %vm536_vm0, %v1590_v31 }
  0xfb   : > { %1466 = vmatprep.mubr.msk.bf16.mxu0 %vm536_vm0, %v1591_v32 }
 0x102   : > { %1467 = vmatmul.mubr.msk.bf16.gmra.mrb[32].mxu0 %vm536_vm0, %v1591_v32 }
 0x103   : > { %1468 = vmatprep.mubr.msk.bf16.mxu0 %vm536_vm0, %v1592_v33 }
 0x10a   : > { %1469 = vmatmul.mubr.msk.bf16.gmra.mrb[36].mxu0 %vm536_vm0, %v1592_v33 }
 0x10b   : > { %1470 = vmatprep.mubr.msk.bf16.mxu0 %vm536_vm0, %v1593_v34 }
 0x112   : > { %1471 = vmatmul.mubr.msk.bf16.gmra.mrb[40].mxu0 %vm536_vm0, %v1593_v34 }
 0x113   : > { %1472 = vmatprep.mubr.msk.bf16.mxu0 %vm536_vm0, %v1594_v35 }
 0x11a   : > { %1473 = vmatmul.mubr.msk.bf16.gmra.mrb[44].mxu0 %vm536_vm0, %v1594_v35 }
 0x11b   : > { %1474 = vmatprep.mubr.msk.bf16.mxu0 %vm536_vm0, %v1595_v36 }
 0x122   : > { %1475 = vmatmul.mubr.msk.bf16.gmra.mrb[48].mxu0 %vm536_vm0, %v1595_v36 }
 0x123   : > { %1476 = vmatprep.mubr.msk.bf16.mxu0 %vm536_vm0, %v1596_v37 }
 0x12a   : > { %1477 = vmatmul.mubr.msk.bf16.gmra.mrb[52].mxu0 %vm536_vm0, %v1596_v37 }
 0x12b   : > { %1478 = vmatprep.mubr.msk.bf16.mxu0 %vm536_vm0, %v1597_v38 }
 0x132   : > { %1479 = vmatmul.mubr.msk.bf16.gmra.mrb[56].mxu0 %vm536_vm0, %v1597_v38 }
 0x133   : > { %1480 = vmatprep.mubr.msk.bf16.mxu0 %vm536_vm0, %v1598_v39 }
 0x13a   : > { %1481 = vmatmul.mubr.msk.bf16.gmra.mrb[60].mxu0 %vm536_vm0, %v1598_v39 }
 0x195   : > { %v2231_v40 = vpop.f32.mrb[0].mxu0 }
 0x196   : > { %v2233_v41 = vpop.f32.mrb[1].mxu0 }
 0x197   : > { %v2235_v42 = vpop.f32.mrb[2].mxu0 }
 0x198   : > { %v2237_v43 = vpop.f32.mrb[3].mxu0 }
 0x19d   : > { %v2239_v45 = vpop.f32.mrb[4].mxu0 }
 0x19e   : > { %v827_v46 = vmax.f32 %v2231_v40, %v2239_v45  ;;  %v2243_v47 = vpop.f32.mrb[5].mxu0 }
 0x19f   : > { %v864_v49 = vmax.f32 %v2233_v41, %v2243_v47  ;;  %v2252_v50 = vpop.f32.mrb[6].mxu0 }
 0x1a0   : > { %v828_v52 = vmax.f32 %v2235_v42, %v2252_v50  ;;  %v2258_v53 = vpop.f32.mrb[7].mxu0 }
 0x1a1   : > { %v865_v54 = vmax.f32 %v2237_v43, %v2258_v53 }
 0x1a5   : > { %v2262_v55 = vpop.f32.mrb[8].mxu0 }
 0x1a6   : > { %v829_v56 = vmax.f32 %v827_v46, %v2262_v55  ;;  %v2265_v57 = vpop.f32.mrb[9].mxu0 }
 0x1a7   : > { %v866_v58 = vmax.f32 %v864_v49, %v2265_v57  ;;  %v2268_v59 = vpop.f32.mrb[10].mxu0 }
 0x1a8   : > { %v830_v60 = vmax.f32 %v828_v52, %v2268_v59  ;;  %v2271_v61 = vpop.f32.mrb[11].mxu0 }
 0x1a9   : > { %v867_v62 = vmax.f32 %v865_v54, %v2271_v61 }
 0x1ad   : > { %v2274_v63 = vpop.f32.mrb[12].mxu0 }
 0x1ae   : > { %v831_v0 = vmax.f32 %v829_v56, %v2274_v63  ;;  %v2277_v1 = vpop.f32.mrb[13].mxu0 }
 0x1af   : > { %v868_v2 = vmax.f32 %v866_v58, %v2277_v1  ;;  %v2280_v3 = vpop.f32.mrb[14].mxu0 }
 0x1b0   : > { %v832_v4 = vmax.f32 %v830_v60, %v2280_v3  ;;  %v2283_v5 = vpop.f32.mrb[15].mxu0 }
 0x1b1   : > { %v869_v6 = vmax.f32 %v867_v62, %v2283_v5 }
 0x1b5   : > { %v2286_v7 = vpop.f32.mrb[16].mxu0 }
 0x1b6   : > { %v833_v8 = vmax.f32 %v831_v0, %v2286_v7  ;;  %v2289_v9 = vpop.f32.mrb[17].mxu0 }
 0x1b7   : > { %v870_v10 = vmax.f32 %v868_v2, %v2289_v9  ;;  %v2292_v11 = vpop.f32.mrb[18].mxu0 }
 0x1b8   : > { %v834_v12 = vmax.f32 %v832_v4, %v2292_v11  ;;  %v2295_v13 = vpop.f32.mrb[19].mxu0 }
 0x1b9   : > { %v871_v14 = vmax.f32 %v869_v6, %v2295_v13 }
 0x1bd   : > { %v2298_v15 = vpop.f32.mrb[20].mxu0 }
 0x1be   : > { %v835_v16 = vmax.f32 %v833_v8, %v2298_v15  ;;  %v2301_v17 = vpop.f32.mrb[21].mxu0 }
 0x1bf   : > { %v872_v18 = vmax.f32 %v870_v10, %v2301_v17  ;;  %v2304_v19 = vpop.f32.mrb[22].mxu0 }
 0x1c0   : > { %v836_v20 = vmax.f32 %v834_v12, %v2304_v19  ;;  %v2307_v21 = vpop.f32.mrb[23].mxu0 }
 0x1c1   : > { %v873_v22 = vmax.f32 %v871_v14, %v2307_v21 }
 0x1c5   : > { %v2310_v23 = vpop.f32.mrb[24].mxu0 }
 0x1c6   : > { %v837_v24 = vmax.f32 %v835_v16, %v2310_v23  ;;  %v2313_v25 = vpop.f32.mrb[25].mxu0 }
 0x1c7   : > { %v874_v26 = vmax.f32 %v872_v18, %v2313_v25  ;;  %v2316_v27 = vpop.f32.mrb[26].mxu0 }
 0x1c8   : > { %v838_v28 = vmax.f32 %v836_v20, %v2316_v27  ;;  %v2319_v29 = vpop.f32.mrb[27].mxu0 }
 0x1c9   : > { %v875_v30 = vmax.f32 %v873_v22, %v2319_v29 }
 0x1cd   : > { %v2322_v31 = vpop.f32.mrb[28].mxu0 }
 0x1ce   : > { %v839_v32 = vmax.f32 %v837_v24, %v2322_v31  ;;  %v2325_v33 = vpop.f32.mrb[29].mxu0 }
 0x1cf   : > { %v876_v34 = vmax.f32 %v874_v26, %v2325_v33  ;;  %v2328_v35 = vpop.f32.mrb[30].mxu0 }
 0x1d0   : > { %v840_v36 = vmax.f32 %v838_v28, %v2328_v35  ;;  %v2331_v37 = vpop.f32.mrb[31].mxu0 }
 0x1d1   : > { %v877_v38 = vmax.f32 %v875_v30, %v2331_v37 }
 0x1d5   : > { %v2334_v39 = vpop.f32.mrb[32].mxu0 }
 0x1d6   : > { %v841_v46 = vmax.f32 %v839_v32, %v2334_v39  ;;  %v2337_v49 = vpop.f32.mrb[33].mxu0 }
 0x1d7   : > { %v878_v51 = vmax.f32 %v876_v34, %v2337_v49  ;;  %v2340_v52 = vpop.f32.mrb[34].mxu0 }
 0x1d8   : > { %v842_v54 = vmax.f32 %v840_v36, %v2340_v52  ;;  %v2343_v56 = vpop.f32.mrb[35].mxu0 }
 0x1d9   : > { %v879_v58 = vmax.f32 %v877_v38, %v2343_v56 }
 0x1dd   : > { %v2346_v60 = vpop.f32.mrb[36].mxu0 }
 0x1de   : > { %v843_v62 = vmax.f32 %v841_v46, %v2346_v60  ;;  %v2349_v0 = vpop.f32.mrb[37].mxu0 }
 0x1df   : > { %v880_v2 = vmax.f32 %v878_v51, %v2349_v0  ;;  %v2352_v4 = vpop.f32.mrb[38].mxu0 }
 0x1e0   : > { %2936 = vst [vmem:[#allocation19_spill] sm:$0xff] %v2352_v4  ;;  %v844_v6 = vmax.f32 %v842_v54, %v2352_v4  ;;  %v2355_v8 = vpop.f32.mrb[39].mxu0 }
 0x1e1   : > { %2937 = vst [vmem:[#allocation20_spill] sm:$0xff] %v2355_v8  ;;  %v881_v10 = vmax.f32 %v879_v58, %v2355_v8 }
 0x1e5   : > { %v2358_v12 = vpop.f32.mrb[40].mxu0 }
 0x1e6   : > { %2938 = vst [vmem:[#allocation21_spill] sm:$0xff] %v2358_v12  ;;  %v845_v14 = vmax.f32 %v843_v62, %v2358_v12  ;;  %v2361_v16 = vpop.f32.mrb[41].mxu0 }
 0x1e7   : > { %2939 = vst [vmem:[#allocation22_spill] sm:$0xff] %v2361_v16  ;;  %v882_v18 = vmax.f32 %v880_v2, %v2361_v16  ;;  %v2364_v20 = vpop.f32.mrb[42].mxu0 }
 0x1e8   : > { %2940 = vst [vmem:[#allocation23_spill] sm:$0xff] %v2364_v20  ;;  %v846_v22 = vmax.f32 %v844_v6, %v2364_v20  ;;  %v2367_v24 = vpop.f32.mrb[43].mxu0 }
 0x1e9   : > { %2941 = vst [vmem:[#allocation24_spill] sm:$0xff] %v2367_v24  ;;  %v883_v26 = vmax.f32 %v881_v10, %v2367_v24  ;;  %v1917_v24 = vmov 1966171168  }
 0x1ed   : > { %v2370_v28 = vpop.f32.mrb[44].mxu0 }
 0x1ee   : > { %2942 = vst [vmem:[#allocation25_spill] sm:$0xff] %v2370_v28  ;;  %v847_v30 = vmax.f32 %v845_v14, %v2370_v28  ;;  %v2373_v32 = vpop.f32.mrb[45].mxu0 }
 0x1ef   : > { %2943 = vst [vmem:[#allocation26_spill] sm:$0xff] %v2373_v32  ;;  %v884_v34 = vmax.f32 %v882_v18, %v2373_v32  ;;  %v2376_v36 = vpop.f32.mrb[46].mxu0 }
 0x1f0   : > { %2944 = vst [vmem:[#allocation27_spill] sm:$0xff] %v2376_v36  ;;  %v848_v38 = vmax.f32 %v846_v22, %v2376_v36  ;;  %v2379_v46 = vpop.f32.mrb[47].mxu0  ;;  %v1916_v22 = vmov 0.0  }
 0x1f1   : > { %2945 = vst [vmem:[#allocation28_spill] sm:$0xff] %v2379_v46  ;;  %v885_v51 = vmax.f32 %v883_v26, %v2379_v46  ;;  %311 = vst [vmem:[#allocation3] sm:$0x77] %v1916_v22 }
 0x1f5   : > { %v2382_v54 = vpop.f32.mrb[48].mxu0 }
 0x1f6   : > { %2946 = vst [vmem:[#allocation29_spill] sm:$0xff] %v2382_v54  ;;  %v849_v58 = vmax.f32 %v847_v30, %v2382_v54  ;;  %v2385_v62 = vpop.f32.mrb[49].mxu0 }
 0x1f7   : > { %2947 = vst [vmem:[#allocation30_spill] sm:$0xff] %v2385_v62  ;;  %v886_v2 = vmax.f32 %v884_v34, %v2385_v62  ;;  %v2388_v6 = vpop.f32.mrb[50].mxu0 }
 0x1f8   : > { %2948 = vst [vmem:[#allocation31_spill] sm:$0xff] %v2388_v6  ;;  %v850_v10 = vmax.f32 %v848_v38, %v2388_v6  ;;  %v2391_v14 = vpop.f32.mrb[51].mxu0 }
 0x1f9   : > { %2949 = vst [vmem:[#allocation32_spill] sm:$0xff] %v2391_v14  ;;  %v887_v18 = vmax.f32 %v885_v51, %v2391_v14 }
 0x1fd   : > { %v2394_v26 = vpop.f32.mrb[52].mxu0 }
 0x1fe   : > { %2950 = vst [vmem:[#allocation33_spill] sm:$0xff] %v2394_v26  ;;  %v851_v44 = vmax.f32 %v849_v58, %v2394_v26  ;;  %v2397_v30 = vpop.f32.mrb[53].mxu0 }
 0x1ff   : > { %2951 = vst [vmem:[#allocation34_spill] sm:$0xff] %v2397_v30  ;;  %v888_v34 = vmax.f32 %v886_v2, %v2397_v30  ;;  %v2400_v62 = vpop.f32.mrb[54].mxu0 }
 0x200   : > { %2952 = vst [vmem:[#allocation35_spill] sm:$0xff] %v2400_v62  ;;  %v852_v38 = vmax.f32 %v850_v10, %v2400_v62  ;;  %v2403_v6 = vpop.f32.mrb[55].mxu0 }
 0x201   : > { %2953 = vst [vmem:[#allocation36_spill] sm:$0xff] %v2403_v6  ;;  %v889_v51 = vmax.f32 %v887_v18, %v2403_v6  ;;  %v2421_v18 = vld.sshfl [vmem:[%s264_s24] sm:$0x33 pattern:$0x76325410] }
 0x202   : > { %2958 = vst [vmem:[#allocation41_spill] sm:$0xff] %v2421_v18 }
 0x205   : > { %v2406_v14 = vpop.f32.mrb[56].mxu0 }
 0x206   : > { %2954 = vst [vmem:[#allocation37_spill] sm:$0xff] %v2406_v14  ;;  %v853_v22 = vmax.f32 %v851_v44, %v2406_v14  ;;  %v2409_v54 = vpop.f32.mrb[57].mxu0  ;;  %v1102_v44 = vcombine.high %v2421_v18, %v2421_v18 }
 0x207   : > { %2955 = vst [vmem:[#allocation38_spill] sm:$0xff] %v2409_v54  ;;  %v890_v58 = vmax.f32 %v888_v34, %v2409_v54  ;;  %v2412_v26 = vpop.f32.mrb[58].mxu0 }
 0x208   : > { %2956 = vst [vmem:[#allocation39_spill] sm:$0xff] %v2412_v26  ;;  %v854_v2 = vmax.f32 %v852_v38, %v2412_v26  ;;  %v2415_v30 = vpop.f32.mrb[59].mxu0  ;;  %1137 = vmatprep.mubr.bf16.mxu1 %v1102_v44  ;;  %v905_v44 = vunpack.c.l.s4 %v1917_v24 }
 0x209   : > { %2957 = vst [vmem:[#allocation40_spill] sm:$0xff] %v2415_v30  ;;  %v891_v10 = vmax.f32 %v889_v51, %v2415_v30 }
 0x20a   : > { %v906_v12 = vunpack.c.0.s8 %v905_v44 }
 0x20d   : > { %v2425_v14 = vpop.f32.mrb[60].mxu0 }
 0x20e   : > { %2959 = vst [vmem:[#allocation42_spill] sm:$0xff] %v2425_v14  ;;  %v855_v34 = vmax.f32 %v853_v22, %v2425_v14  ;;  %v2428_v54 = vpop.f32.mrb[61].mxu0 }
 0x20f   : > { %2960 = vst [vmem:[#allocation43_spill] sm:$0xff] %v2428_v54  ;;  %v892_v38 = vmax.f32 %v890_v58, %v2428_v54  ;;  %v2431_v26 = vpop.f32.mrb[62].mxu0  ;;  %v2962_v58 = vlaneseq }
 0x210   : > { %2961 = vst [vmem:[#allocation44_spill] sm:$0xff] %v2431_v26  ;;  %v856_v51 = vmax.f32 %v854_v2, %v2431_v26  ;;  %v823_v30 = vpop.f32.mrb[63].mxu0 }
 0x211   : > { %v893_v6 = vmax.f32 %v891_v10, %v823_v30  ;;  %v908_v54 = vshrl.u32 %v2962_v58, 7  ;;  %v2974_v58 = vld [vmem:[#allocation26_spill] sm:$0xff] }
 0x212   : > { %v857_v62 = vmax.f32 %v855_v34, %v856_v51 }
 0x213   : > { %v894_v46 = vmax.f32 %v892_v38, %v893_v6  ;;  %v909_v10 = vsub.s32 %v906_v12, %v908_v54  ;;  %v2435_v38 = vld [vmem:[#allocation2] sm:$0x3]  ;;  %v2439_v24 = vsub.s32 1, %v908_v54 }
 0x214   : > { %v858_v36 = vrot.slane %v857_v62, 4  ;;  %2963 = vst [vmem:[#allocation45_spill] sm:$0xff] %v2435_v38 }
 0x215   : > { %v895_v32 = vrot.slane %v894_v46, 4  ;;  %2965 = vst [vmem:[#allocation47_spill] sm:$0xff] %v2439_v24 }
 0x216   : > { %v859_v18 = vmax.f32 %v857_v62, %v858_v36  ;;  %v2977_v62 = vld [vmem:[#allocation28_spill] sm:$0xff] }
 0x217   : > { %v896_v28 = vmax.f32 %v894_v46, %v895_v32  ;;  %v2437_v32 = vsub.s32 0, %v908_v54  ;;  %v2992_v54 = vld [vmem:[#allocation44_spill] sm:$0xff] }
 0x218   : > { %v860_v20 = vrot.slane %v859_v18, 2 }
 0x219   : > { %v897_v22 = vrot.slane %v896_v28, 2  ;;  %2964 = vst [vmem:[#allocation46_spill] sm:$0xff] %v2437_v32 }
 0x21a   : > { %v861_v14 = vmax.f32 %v859_v18, %v860_v20 }
 0x21b   : > { %v898_v16 = vmax.f32 %v896_v28, %v897_v22  ;;  %v2976_v22 = vld [vmem:[#allocation27_spill] sm:$0xff] }
 0x21c   : > { %v862_v8 = vrot.slane %v861_v14, 1 }
 0x21d   : > { %v899_v4 = vrot.slane %v898_v16, 1 }
 0x21e   : > { %v863_v2 = vmax.f32 %v861_v14, %v862_v8  ;;  %v2969_v8 = vld [vmem:[#allocation21_spill] sm:$0xff]  ;;  %v2988_v14 = vld [vmem:[#allocation39_spill] sm:$0xff] }
 0x21f   : > { %v900_v26 = vmax.f32 %v898_v16, %v899_v4 }
 0x221   : > { %v903_v34 = vcombine.low %v863_v2, %v900_v26  ;;  %v2970_v2 = vld [vmem:[#allocation22_spill] sm:$0xff] }
 0x222   : > { %v2987_v26 = vld [vmem:[#allocation38_spill] sm:$0xff] }
 0x223   : > { %v910_v6 = vrot.slane %v903_v34, %v909_v10  ;;  %v2972_v34 = vld [vmem:[#allocation24_spill] sm:$0xff] }
 0x225   : > { %v917_v36 = vrot.slane %v910_v6, %v909_v10  ;;  %v2971_v10 = vld [vmem:[#allocation23_spill] sm:$0xff]  ;;  %v2973_v6 = vld [vmem:[#allocation25_spill] sm:$0xff] }
 0x227   : > { %v2442_v20 = vmax.f32 %v2435_v38, %v917_v36  ;;  %v2967_v36 = vld [vmem:[#allocation19_spill] sm:$0xff]  ;;  %v2990_v38 = vld [vmem:[#allocation42_spill] sm:$0xff] }
 0x229   : > { %2966 = vst [vmem:[#allocation48_spill] sm:$0xff] %v2442_v20  ;;  %v2446_v28 = vrot.slane %v2442_v20, %v2437_v32  ;;  %v2450_v4 = vrot.slane %v2442_v20, %v2439_v24  ;;  %1174 = vst.msk [vmem:[#allocation2] sm:$0x3] %vm2246_vm1, %v2442_v20  ;;  %v2989_v20 = vld [vmem:[#allocation40_spill] sm:$0xff] }
 0x22b   : > { %v996_v12 = vsub.f32 %v823_v30, %v2450_v4  ;;  %v2986_v30 = vld [vmem:[#allocation37_spill] sm:$0xff]  ;;  %v991_v24 = vsub.f32 %v2988_v14, %v2446_v28  ;;  %v995_v18 = vsub.f32 %v2992_v54, %v2446_v28  ;;  %v2993_v46 = vsub.f32 %v2231_v40, %v2446_v28 }
 0x22c   : > { %v2994_v16 = vsub.f32 %v2233_v41, %v2450_v4  ;;  %v2995_v32 = vsub.f32 %v2235_v42, %v2446_v28  ;;  %v2996_v44 = vsub.f32 %v2237_v43, %v2450_v4  ;;  %v2997_v51 = vsub.f32 %v2239_v45, %v2446_v28 }
 0x22d   : > { %1600 = vpow2.f32 %v996_v12  ;;  %v2968_v12 = vld [vmem:[#allocation20_spill] sm:$0xff]  ;;  %v2998_v40 = vsub.f32 %v2243_v47, %v2450_v4  ;;  %v2999_v41 = vsub.f32 %v2252_v50, %v2446_v28  ;;  %v3000_v42 = vsub.f32 %v2258_v53, %v2450_v4 }
 0x22e   : > { %1602 = vpow2.f32 %v2993_v46  ;;  %v3001_v43 = vsub.f32 %v2262_v55, %v2446_v28  ;;  %v3002_v45 = vsub.f32 %v2265_v57, %v2450_v4  ;;  %v3003_v47 = vsub.f32 %v2268_v59, %v2446_v28 }
 0x22f   : > { %1604 = vpow2.f32 %v2994_v16  ;;  %v3004_v50 = vsub.f32 %v2271_v61, %v2450_v4  ;;  %v3005_v46 = vsub.f32 %v2274_v63, %v2446_v28  ;;  %v3006_v57 = vsub.f32 %v2277_v1, %v2450_v4 }
 0x230   : > { %1606 = vpow2.f32 %v2995_v32  ;;  %v3007_v59 = vsub.f32 %v2280_v3, %v2446_v28  ;;  %v3008_v61 = vsub.f32 %v2283_v5, %v2450_v4  ;;  %v3009_v63 = vsub.f32 %v2286_v7, %v2446_v28 }
 0x231   : > { %1608 = vpow2.f32 %v2996_v44 }
 0x232   : > { %1610 = vpow2.f32 %v2997_v51 }
 0x233   : > { %1612 = vpow2.f32 %v2998_v40 }
 0x234   : > { %1614 = vpow2.f32 %v2999_v41 }
 0x235   : > { %1616 = vpow2.f32 %v3000_v42 }
 0x236   : > { %1618 = vpow2.f32 %v3001_v43  ;;  %v3010_v43 = vsub.f32 %v2289_v9, %v2450_v4 }
 0x237   : > { %v2550_v48 = vpop.eup %1600  ;;  %1620 = vpow2.f32 %v3002_v45 }
 0x238   : > { %2975 = vst [vmem:[#allocation19_spill] sm:$0xff] %v2550_v48  ;;  %v2991_v48 = vld [vmem:[#allocation43_spill] sm:$0xff]  ;;  %v1603_v32 = vpop.eup %1602  ;;  %1622 = vpow2.f32 %v3003_v47 }
 0x239   : > { %v1605_v16 = vpop.eup %1604  ;;  %1624 = vpow2.f32 %v3004_v50  ;;  %v3013_v50 = vsub.f32 %v2298_v15, %v2446_v28 }
 0x23a   : > { %v1607_v53 = vpop.eup %1606  ;;  %1626 = vpow2.f32 %v3005_v46 }
 0x23b   : > { %v1609_v55 = vpop.eup %1608  ;;  %1628 = vpow2.f32 %v3006_v57  ;;  %v1061_v51 = vpack.c.bf16 %v1607_v53, %v1603_v32  ;;  %v3011_v32 = vsub.f32 %v2292_v11, %v2446_v28  ;;  %v3014_v53 = vsub.f32 %v2301_v17, %v2450_v4 }
 0x23c   : > { %v1611_v44 = vpop.eup %1610  ;;  %1630 = vpow2.f32 %v3007_v59  ;;  %v1062_v40 = vpack.c.bf16 %v1609_v55, %v1605_v16  ;;  %v3012_v16 = vsub.f32 %v2295_v13, %v2450_v4  ;;  %v3015_v55 = vsub.f32 %v2304_v19, %v2446_v28 }
 0x23d   : > { %v1613_v41 = vpop.eup %1612  ;;  %1632 = vpow2.f32 %v3008_v61  ;;  %v3018_v59 = vsub.f32 %v2313_v25, %v2450_v4 }
 0x23e   : > { %v1615_v42 = vpop.eup %1614  ;;  %1634 = vpow2.f32 %v3009_v63  ;;  %1105 = vmatprep.subr.bf16.mxu1 %v1062_v40  ;;  %v3021_v63 = vsub.f32 %v2322_v31, %v2446_v28 }
 0x23f   : > { %v1617_v1 = vpop.eup %1616  ;;  %1636 = vpow2.f32 %v3010_v43  ;;  %1106 = vmatpush1.bf16.msra.mxu1 %v1061_v51  ;;  %v1063_v3 = vpack.c.bf16 %v1615_v42, %v1611_v44  ;;  %v3016_v51 = vsub.f32 %v2307_v21, %v2450_v4  ;;  %v3017_v44 = vsub.f32 %v2310_v23, %v2446_v28  ;;  %v3062_v54 = vld [vmem:[#allocation19_spill] sm:$0xff] }
 0x240   : > { %v1619_v45 = vpop.eup %1618  ;;  %1638 = vpow2.f32 %v3011_v32  ;;  %v1064_v5 = vpack.c.bf16 %v1617_v1, %v1613_v41  ;;  %v3019_v41 = vsub.f32 %v2316_v27, %v2446_v28  ;;  %v3020_v42 = vsub.f32 %v2319_v29, %v2450_v4 }
 0x241   : > { %v1621_v47 = vpop.eup %1620  ;;  %1640 = vpow2.f32 %v3012_v16  ;;  %v3022_v1 = vsub.f32 %v2325_v33, %v2450_v4  ;;  %v3024_v32 = vsub.f32 %v2331_v37, %v2450_v4 }
 0x242   : > { %v1623_v7 = vpop.eup %1622  ;;  %1642 = vpow2.f32 %v3013_v50  ;;  %1107 = vmatprep.subr.bf16.mxu1 %v1064_v5  ;;  %v3025_v5 = vsub.f32 %v2334_v39, %v2446_v28 }
 0x243   : > { %v1625_v9 = vpop.eup %1624  ;;  %1644 = vpow2.f32 %v3014_v53  ;;  %1108 = vmatpush1.bf16.msra.mxu1 %v1063_v3  ;;  %v1065_v11 = vpack.c.bf16 %v1623_v7, %v1619_v45  ;;  %v3023_v3 = vsub.f32 %v2328_v35, %v2446_v28  ;;  %v3027_v7 = vsub.f32 %v2340_v52, %v2446_v28 }
 0x244   : > { %v1627_v46 = vpop.eup %1626  ;;  %1646 = vpow2.f32 %v3015_v55  ;;  %v1066_v13 = vpack.c.bf16 %v1625_v9, %v1621_v47  ;;  %v3026_v47 = vsub.f32 %v2337_v49, %v2450_v4  ;;  %v3028_v9 = vsub.f32 %v2343_v56, %v2450_v4 }
 0x245   : > { %v1629_v57 = vpop.eup %1628  ;;  %1648 = vpow2.f32 %v3016_v51  ;;  %v3029_v53 = vsub.f32 %v2346_v60, %v2446_v28  ;;  %v3031_v55 = vsub.f32 %v2967_v36, %v2446_v28  ;;  %v3033_v51 = vsub.f32 %v2969_v8, %v2446_v28 }
 0x246   : > { %v1631_v15 = vpop.eup %1630  ;;  %1650 = vpow2.f32 %v3017_v44  ;;  %1109 = vmatprep.subr.bf16.mxu1 %v1066_v13 }
 0x247   : > { %v1633_v17 = vpop.eup %1632  ;;  %1652 = vpow2.f32 %v3018_v59  ;;  %1110 = vmatpush1.bf16.msra.mxu1 %v1065_v11  ;;  %v1067_v19 = vpack.c.bf16 %v1631_v15, %v1627_v46  ;;  %v3030_v11 = vsub.f32 %v2349_v0, %v2450_v4  ;;  %v3034_v15 = vsub.f32 %v2970_v2, %v2450_v4 }
 0x248   : > { %v1635_v40 = vpop.eup %1634  ;;  %1654 = vpow2.f32 %v3019_v41  ;;  %v1068_v21 = vpack.c.bf16 %v1633_v17, %v1629_v57  ;;  %v3032_v57 = vsub.f32 %v2968_v12, %v2450_v4  ;;  %v3035_v17 = vsub.f32 %v2971_v10, %v2446_v28 }
 0x249   : > { %v1637_v61 = vpop.eup %1636  ;;  %1656 = vpow2.f32 %v3020_v42  ;;  %v3038_v41 = vsub.f32 %v2974_v58, %v2450_v4 }
 0x24a   : > { %v1639_v23 = vpop.eup %1638  ;;  %1658 = vpow2.f32 %v3021_v63  ;;  %1111 = vmatprep.subr.bf16.mxu1 %v1068_v21  ;;  %v3041_v63 = vld [vmem:[#allocation29_spill] sm:$0xff] }
 0x24b   : > { %v1641_v25 = vpop.eup %1640  ;;  %1660 = vpow2.f32 %v3022_v1  ;;  %1112 = vmatpush1.bf16.msra.mxu1 %v1067_v19  ;;  %v1069_v27 = vpack.c.bf16 %v1639_v23, %v1635_v40  ;;  %v3036_v19 = vsub.f32 %v2972_v34, %v2450_v4  ;;  %v3037_v40 = vsub.f32 %v2973_v6, %v2446_v28  ;;  %v3043_v1 = vld [vmem:[#allocation30_spill] sm:$0xff] }
 0x24c   : > { %v1643_v43 = vpop.eup %1642  ;;  %1662 = vpow2.f32 %v3023_v3  ;;  %v1070_v29 = vpack.c.bf16 %v1641_v25, %v1637_v61  ;;  %v3039_v61 = vsub.f32 %v2976_v22, %v2446_v28  ;;  %v3040_v23 = vsub.f32 %v2977_v62, %v2450_v4  ;;  %v3045_v3 = vld [vmem:[#allocation31_spill] sm:$0xff] }
 0x24d   : > { %v1645_v45 = vpop.eup %1644  ;;  %1664 = vpow2.f32 %v3024_v32  ;;  %v3042_v25 = vsub.f32 %v3041_v63, %v2446_v28  ;;  %v3047_v32 = vld [vmem:[#allocation32_spill] sm:$0xff] }
 0x24e   : > { %v1647_v31 = vpop.eup %1646  ;;  %1666 = vpow2.f32 %v3025_v5  ;;  %1113 = vmatprep.subr.bf16.mxu1 %v1070_v29  ;;  %v3046_v29 = vsub.f32 %v3045_v3, %v2446_v28 }
 0x24f   : > { %v1649_v33 = vpop.eup %1648  ;;  %1668 = vpow2.f32 %v3026_v47  ;;  %1114 = vmatpush1.bf16.msra.mxu1 %v1069_v27  ;;  %v1071_v35 = vpack.c.bf16 %v1647_v31, %v1643_v43  ;;  %v3044_v27 = vsub.f32 %v3043_v1, %v2450_v4  ;;  %v3048_v31 = vsub.f32 %v3047_v32, %v2450_v4 }
 0x250   : > { %v1651_v16 = vpop.eup %1650  ;;  %1670 = vpow2.f32 %v3027_v7  ;;  %v1072_v37 = vpack.c.bf16 %v1649_v33, %v1645_v45  ;;  %v3049_v33 = vld [vmem:[#allocation33_spill] sm:$0xff] }
 0x251   : > { %v1653_v50 = vpop.eup %1652  ;;  %1672 = vpow2.f32 %v3028_v9  ;;  %v3050_v47 = vsub.f32 %v3049_v33, %v2446_v28  ;;  %v3053_v9 = vld [vmem:[#allocation35_spill] sm:$0xff] }
 0x252   : > { %v1655_v39 = vpop.eup %1654  ;;  %1674 = vpow2.f32 %v3029_v53  ;;  %1115 = vmatprep.subr.bf16.mxu1 %v1072_v37 }
 0x253   : > { %v1657_v49 = vpop.eup %1656  ;;  %1676 = vpow2.f32 %v3030_v11  ;;  %1116 = vmatpush1.bf16.msra.mxu1 %v1071_v35  ;;  %v1073_v52 = vpack.c.bf16 %v1655_v39, %v1651_v16  ;;  %v3051_v16 = vld [vmem:[#allocation34_spill] sm:$0xff]  ;;  %v3054_v39 = vsub.f32 %v3053_v9, %v2446_v28  ;;  %v3055_v11 = vld [vmem:[#allocation36_spill] sm:$0xff] }
 0x254   : > { %v1659_v46 = vpop.eup %1658  ;;  %1678 = vpow2.f32 %v3031_v55  ;;  %v1074_v56 = vpack.c.bf16 %v1657_v49, %v1653_v50  ;;  %v3052_v7 = vsub.f32 %v3051_v16, %v2450_v4  ;;  %v3057_v55 = vsub.f32 %v2986_v30, %v2446_v28 }
 0x255   : > { %v1661_v13 = vpop.eup %1660  ;;  %1680 = vpow2.f32 %v3032_v57 }
 0x256   : > { %v1663_v60 = vpop.eup %1662  ;;  %1682 = vpow2.f32 %v3033_v51  ;;  %1117 = vmatprep.subr.bf16.mxu1 %v1074_v56 }
 0x257   : > { %v1665_v0 = vpop.eup %1664  ;;  %1684 = vpow2.f32 %v3034_v15  ;;  %1118 = vmatpush1.bf16.msra.mxu1 %v1073_v52  ;;  %v1075_v36 = vpack.c.bf16 %v1663_v60, %v1659_v46  ;;  %v3056_v52 = vsub.f32 %v3055_v11, %v2450_v4  ;;  %v3059_v15 = vsub.f32 %v2989_v20, %v2450_v4 }
 0x258   : > { %v1667_v44 = vpop.eup %1666  ;;  %1686 = vpow2.f32 %v3035_v17  ;;  %v1076_v12 = vpack.c.bf16 %v1665_v0, %v1661_v13  ;;  %v3058_v13 = vsub.f32 %v2987_v26, %v2450_v4 }
 0x259   : > { %v1669_v59 = vpop.eup %1668  ;;  %1688 = vpow2.f32 %v3036_v19 }
 0x25a   : > { %v1671_v8 = vpop.eup %1670  ;;  %1690 = vpow2.f32 %v3037_v40  ;;  %1119 = vmatprep.subr.bf16.mxu1 %v1076_v12 }
 0x25b   : > { %v1673_v2 = vpop.eup %1672  ;;  %1692 = vpow2.f32 %v3038_v41  ;;  %1120 = vmatpush1.bf16.msra.mxu1 %v1075_v36  ;;  %v1077_v10 = vpack.c.bf16 %v1671_v8, %v1667_v44  ;;  %v3060_v36 = vsub.f32 %v2990_v38, %v2446_v28  ;;  %v3061_v44 = vsub.f32 %v2991_v48, %v2450_v4 }
 0x25c   : > { %v1675_v21 = vpop.eup %1674  ;;  %1694 = vpow2.f32 %v3039_v61  ;;  %v1078_v34 = vpack.c.bf16 %v1673_v2, %v1669_v59 }
 0x25d   : > { %v1677_v42 = vpop.eup %1676  ;;  %1696 = vpow2.f32 %v3040_v23  ;;  %v3065_v23 = vld [vmem:[#allocation48_spill] sm:$0xff] }
 0x25e   : > { %v1679_v6 = vpop.eup %1678  ;;  %1698 = vpow2.f32 %v3042_v25  ;;  %1121 = vmatprep.subr.bf16.mxu1 %v1078_v34  ;;  %v3063_v34 = vld [vmem:[#allocation41_spill] sm:$0xff]  ;;  %v1146_v25 = vld [vmem:[#allocation3] sm:$0x77] }
 0x25f   : > { %v1681_v58 = vpop.eup %1680  ;;  %1700 = vpow2.f32 %v3044_v27  ;;  %1122 = vmatpush1.bf16.msra.mxu1 %v1077_v10  ;;  %v1079_v22 = vpack.c.bf16 %v1679_v6, %v1675_v21  ;;  %v3068_v27 = vld [vmem:[#allocation47_spill] sm:$0xff] }
 0x260   : > { %v1683_v43 = vpop.eup %1682  ;;  %1702 = vpow2.f32 %v3046_v29  ;;  %v1080_v62 = vpack.c.bf16 %v1681_v58, %v1677_v42  ;;  %v3064_v42 = vld [vmem:[#allocation45_spill] sm:$0xff]  ;;  %v3067_v58 = vld [vmem:[#allocation46_spill] sm:$0xff] }
 0x261   : > { %v1685_v45 = vpop.eup %1684  ;;  %1704 = vpow2.f32 %v3048_v31  ;;  %v3066_v6 = vsub.f32 %v3064_v42, %v3065_v23 }
 0x262   : > { %v1687_v5 = vpop.eup %1686  ;;  %1706 = vpow2.f32 %v3050_v47  ;;  %1123 = vmatprep.subr.bf16.mxu1 %v1080_v62 }
 0x263   : > { %v1689_v35 = vpop.eup %1688  ;;  %1708 = vpow2.f32 %v3052_v7  ;;  %1124 = vmatpush1.bf16.msra.mxu1 %v1079_v22  ;;  %v1081_v37 = vpack.c.bf16 %v1687_v5, %v1683_v43  ;;  %v1159_v43 = vcombine.high %v1146_v25, %v1146_v25 }
 0x264   : > { %v1691_v50 = vpop.eup %1690  ;;  %1710 = vpow2.f32 %v3054_v39  ;;  %v1082_v53 = vpack.c.bf16 %v1689_v35, %v1685_v45 }
 0x265   : > { %v1693_v49 = vpop.eup %1692  ;;  %1712 = vpow2.f32 %v3056_v52 }
 0x266   : > { %v1695_v46 = vpop.eup %1694  ;;  %1714 = vpow2.f32 %v3057_v55  ;;  %1125 = vmatprep.subr.bf16.mxu1 %v1082_v53 }
 0x267   : > { %v1697_v56 = vpop.eup %1696  ;;  %1716 = vpow2.f32 %v3058_v13  ;;  %1126 = vmatpush1.bf16.msra.mxu1 %v1081_v37  ;;  %v1083_v57 = vpack.c.bf16 %v1695_v46, %v1691_v50 }
 0x268   : > { %v1699_v60 = vpop.eup %1698  ;;  %1718 = vpow2.f32 %v991_v24  ;;  %v1084_v51 = vpack.c.bf16 %v1697_v56, %v1693_v49 }
 0x269   : > { %v1701_v0 = vpop.eup %1700  ;;  %1720 = vpow2.f32 %v3059_v15 }
 0x26a   : > { %v1703_v30 = vpop.eup %1702  ;;  %1722 = vpow2.f32 %v3060_v36  ;;  %1127 = vmatprep.subr.bf16.mxu1 %v1084_v51 }
 0x26b   : > { %v1705_v26 = vpop.eup %1704  ;;  %1724 = vpow2.f32 %v3061_v44  ;;  %1128 = vmatpush1.bf16.msra.mxu1 %v1083_v57  ;;  %v1085_v14 = vpack.c.bf16 %v1703_v30, %v1699_v60 }
 0x26c   : > { %v1707_v24 = vpop.eup %1706  ;;  %1726 = vpow2.f32 %v995_v18  ;;  %v1086_v20 = vpack.c.bf16 %v1705_v26, %v1701_v0 }
 0x26d   : > { %v1709_v17 = vpop.eup %1708  ;;  %1728 = vpow2.f32 %v3066_v6 }
 0x26e   : > { %v1711_v12 = vpop.eup %1710  ;;  %1129 = vmatprep.subr.bf16.mxu1 %v1086_v20 }
 0x26f   : > { %v1713_v59 = vpop.eup %1712  ;;  %1130 = vmatpush1.bf16.msra.mxu1 %v1085_v14  ;;  %v1087_v38 = vpack.c.bf16 %v1711_v12, %v1707_v24 }
 0x270   : > { %v1715_v19 = vpop.eup %1714  ;;  %v1088_v8 = vpack.c.bf16 %v1713_v59, %v1709_v17 }
 0x271   : > { %v1717_v40 = vpop.eup %1716 }
 0x272   : > { %v1719_v2 = vpop.eup %1718  ;;  %1131 = vmatprep.subr.bf16.mxu1 %v1088_v8 }
 0x273   : > { %v1721_v4 = vpop.eup %1720  ;;  %1132 = vmatpush1.bf16.msra.mxu1 %v1087_v38  ;;  %v1089_v48 = vpack.c.bf16 %v1719_v2, %v1715_v19 }
 0x274   : > { %v1723_v41 = vpop.eup %1722  ;;  %v1090_v10 = vpack.c.bf16 %v1721_v4, %v1717_v40 }
 0x275   : > { %v1725_v21 = vpop.eup %1724 }
 0x276   : > { %v1727_v28 = vpop.eup %1726  ;;  %1133 = vmatprep.subr.bf16.mxu1 %v1090_v10  ;;  %v1092_v18 = vpack.c.bf16 %v3062_v54, %v1725_v21 }
 0x277   : > { %1134 = vmatpush1.bf16.msra.mxu1 %v1089_v48  ;;  %v1091_v61 = vpack.c.bf16 %v1727_v28, %v1723_v41  ;;  %v1729_v63 = vpop.eup %1728 }
 0x278   : > { %1135 = vmatprep.subr.bf16.mxu1 %v1092_v18  ;;  %v1151_v1 = vrot.slane %v1729_v63, %v3067_v58  ;;  %v1155_v22 = vrot.slane %v1729_v63, %v3068_v27 }
 0x27a   : > { %v1161_v3 = vmul.f32 %v1151_v1, %v1146_v25  ;;  %v1162_v62 = vmul.f32 %v1159_v43, %v1155_v22 }
 0x27b   : > { %1136 = vmatpush1.bf16.msra.mxu1 %v1091_v61 }
 0x27e   : > { %1138 = vmatmul.mubr.bf16.vlgmr.msra.gmra.mrb[0].mxu1 %v3063_v34 }
 0x351   : > { %v1139_v29 = vpop.f32.mrb[0].mxu1 }
 0x352   : > { %v1163_v45 = vadd.f32 %v1161_v3, %v1139_v29  ;;  %v1141_v32 = vpop.f32.mrb[1].mxu1 }
 0x353   : > { %v1164_v31 = vadd.f32 %v1162_v62, %v1141_v32  ;;  %v1143_v5 = vpop.f32.mrb[2].mxu1 }
 0x354   : > { %v1144_v33 = vpop.f32.mrb[3].mxu1 }
 0x355   : > { %v1167_v47 = vcombine.low %v1163_v45, %v1164_v31 }
 0x357   : > { %1169 = vst [vmem:[#allocation3] sm:$0x77] %v1167_v47 }
 0x35e   : > { %v1179_v35 = vld [vmem:[#allocation3 + $0x2] ss:$4 sm:$0x3]  ;;  %v1181_v9 = vld [vmem:[#allocation3] sm:$0x33] }
 0x35f   : > { %1730 = vrcp.f32 %v1179_v35 }
 0x369   : > { %v1731_v16 = vpop.eup %1730 }
 0x36a   : > { %v1186_v7 = vrot.slane %v1731_v16, %v3067_v58  ;;  %v1190_v37 = vrot.slane %v1731_v16, %v3068_v27 }
 0x36c   : > { %v1191_v50 = vcombine.low %v1186_v7, %v1190_v37 }
 0x36e   : > { %v1193_v39 = vmul.f32 %v1191_v50, %v1181_v9 }
 0x370   : > { %1424 = vst.sshfl [vmem:[%s296_s9] sm:$0x33 pattern:$0x76325410] %v1193_v39 }
 0x371   : > { %1835 = shalt.err (!%p1832_p13)
}
 0x372   : > { %s1836_s1 = scalar_lea.hbm %s2792_s22, 64  ;;  %s1840_s8 = scalar_lea.hbm %s2842_s3, 128 }
 0x373   : > { %p1837_p11 = scmp.ne.s32.totalorder %s2792_s22, %s1836_s1  ;;  %p1841_p7 = scmp.lt.u32.totalorder %s2792_s22, %s2842_s3 }
 0x374   : > { %p1842_p3 = scmp.lt.u32.totalorder %s1840_s8, %s1836_s1  ;;  %p1844_p0 = scmp.lt.u32.totalorder %s1836_s1, %s2792_s22 }
 0x375   : > { %p1838_p2 = pnand %p1837_p11, %p3069_p10 }
 0x376   : > { %p1843_p4 = por %p1842_p3, %p1841_p7 }
 0x377   : > { %p1839_p5 = pneg %p1838_p2 }
 0x378   : > { %p1845_p8 = por %p1844_p0, %p1843_p4 }
 0x37a   : > { %p1846_p9 = pnand %p1845_p8, %p1839_p5 }
 0x37c   : > { %1849 = shalt.err (!%p1846_p9)
}
 0x37d   : > { %1496 = dma.vmem_to_hbm [thread:$0]  (%p3069_p10), %s2787_s10, 64, %s2792_s22, %s1205_s29  }
 0x37e PF: > { %s3070_s17 = sld [smem:[#allocation18_spill]]  ;;  %s3071_s26 = sld [smem:[#allocation15_spill]] }
 0x37f   : > { %s1233_s27 = sand.u32 1, %s1888_s12  }
 0x380   : > { %s1234_s4 = scalar_lea.sflag [#allocation6], %s1233_s27 }
 0x384   : > { %p3072_p12 = scmp.ne.s32.totalorder %s3070_s17, 0  ;;  %p3073_p1 = scmp.ge.s32.totalorder %s3071_s26, 2 }
 0x386   : > { %p1509_p6 = pnand %p3073_p1, %p3072_p12 }
 0x388   : > { %1883 = dma.done.wait (!%p1509_p6), %s1234_s4, 64  }
 0x389   : > { %1885 = vsyncadd (!%p1509_p6), %s1234_s4, 4294967232  ;;  %s22_s17 = sadd.s32 1, %s3071_s26   ;;  %s3074_s11 = sld [smem:[#allocation14_spill]] }
 0x38a   : > { %p19_p13 = scmp.ge.s32.totalorder %s22_s17, 4   ;;  %s3075_s14 = sld [smem:[#allocation17_spill]] }
 0x38b   : > { %s3076_s25 = sld [smem:[#allocation16_spill]]  ;;  %s3077_s12 = smov %s1892_s13 }
 0x38c   : > { %s3079_s15 = smov %s1904_s16  ;;  %21 = sbr.rel (!%p19_p13) target bundleno = 11 (0xb), region = 110 }
 0x38f   : > { %s3078_s13 = smov %s3074_s11 }
 0x391   : > { %s3080_s16 = smov %s3076_s25 }
 0x393   :  { %1239 = vsyncpa [#allocation5], 1 }
 0x394   :  { %1241 = vsyncpa [#allocation5 + $0x1], 1 }
 0x395   :  { %1242 = vsyncpa [#allocation8], 1 }
 0x396   :  { %1244 = vsyncpa [#allocation8 + $0x1], 1 }
 0x397   :  { %1245 = vsyncpa [#allocation6], 1 }
 0x398   :  { %1247 = vsyncpa [#allocation6 + $0x1], 1 }

</bundles_post_ra>
